<compile_context>
chip_gen: v6e
topology: v6e:2x2x1
jax: 0.10.0
libtpu: 0.0.40
codegen_flags: <defaults>
</compile_context>

<pallas_src>
import functools

import jax
import jax.numpy as jnp
from jax.experimental import pallas as pl
from jax.experimental.pallas import tpu as pltpu


def _round_up(x, m):
    return ((x + m - 1) // m) * m


def _focal_loss_kernel(*refs, gamma, total_n, block_n, num_steps, has_weight,
                       needs_mask):
    if has_weight:
        logits_ref, targets_ref, weight_ref, out_ref, acc_ref = refs
    else:
        logits_ref, targets_ref, out_ref, acc_ref = refs
        weight_ref = None

    p = pl.program_id(0)          # per-core partial (parallel axis)
    j = pl.program_id(1)          # batch-tile reduction (arbitrary axis)

    @pl.when(j == 0)
    def _():
        acc_ref[...] = jnp.zeros_like(acc_ref)

    logits = logits_ref[...].astype(jnp.float32)      # (block_n, C)
    tgt = targets_ref[...]                            # (block_n, 1) int32

    # log-softmax over the class (lane) axis. Only the target entry is needed,
    # so select from `shifted` and subtract lse afterwards — the full
    # (block_n, C) log_probs array is never materialized.
    m = jnp.max(logits, axis=1, keepdims=True)
    shifted = logits - m
    lse = jnp.log(jnp.sum(jnp.exp(shifted), axis=1, keepdims=True))

    # gather(1, targets) via one-hot mask (no cross-lane gather on TPU)
    class_ids = jax.lax.broadcasted_iota(jnp.int32, shifted.shape, 1)
    one_hot = class_ids == tgt                        # (block_n, C)

    target_logp = (jnp.sum(jnp.where(one_hot, shifted, 0.0),
                           axis=1, keepdims=True) - lse)   # (block_n, 1)
    p_t = jnp.exp(target_logp)

    # fp rounding can make (1 - p_t) slightly negative -> NaN under float pow
    one_minus_p = jnp.maximum(1.0 - p_t, 0.0)

    g = float(gamma)
    if g == 0.0:
        focal_w = None                                # weight is identically 1
    elif g.is_integer() and 1.0 <= g <= 4.0:
        focal_w = one_minus_p                         # repeated multiplies,
        for _ in range(int(g) - 1):                   # no exp/log on the EUP
            focal_w = focal_w * one_minus_p
    else:
        focal_w = one_minus_p ** g

    ce = -target_logp                                 # nll_loss, reduction='none'
    if has_weight:
        w = weight_ref[...].astype(jnp.float32)       # (1, C), resident block
        w_t = jnp.sum(jnp.where(one_hot, w, 0.0), axis=1, keepdims=True)
        ce = ce * w_t

    focal = ce if focal_w is None else focal_w * ce   # (block_n, 1)

    if needs_mask:
        # zero the contribution of rows added by padding N up to the grid size
        row0 = (p * num_steps + j) * block_n
        rows = row0 + jax.lax.broadcasted_iota(jnp.int32, focal.shape, 0)
        focal = jnp.where(rows < total_n, focal, 0.0)

    # deferred reduction: plain VPU add into the vector-shaped accumulator
    acc_ref[...] += focal

    @pl.when(j == num_steps - 1)
    def _():
        psum = jnp.sum(acc_ref[...])                  # one XLU reduce per partial
        out_ref[...] = jnp.full(out_ref.shape, psum, out_ref.dtype)


def focal_loss(logits, targets, *, weight=None, gamma=2.0, reduction="mean",
               block_n=1024, num_partials=2):
    """Focal loss. logits: (N, C), targets: (N,) int. reduction in {'mean','sum'}."""
    if reduction not in ("mean", "sum"):
        raise NotImplementedError("only reduction='mean'/'sum' supported")
    N, C = logits.shape

    # Tile sizing: keep the double-buffered logits tile <= ~8 MiB of VMEM so it
    # fits the scoped limit on every chip (v7x's smaller VMEM included), never
    # exceed the (row-padded) batch, and stay a multiple of 8 sublanes.
    vmem_rows = max(8, (8 << 20) // max(1, 2 * C * 4))
    bn = max(8, (min(int(block_n), vmem_rows, _round_up(N, 8)) // 8) * 8)

    blocks_needed = -(-N // bn)
    P = max(1, min(int(num_partials), blocks_needed))   # per-core partials (v7x: 2 TCs)
    num_steps = -(-blocks_needed // P)
    n_pad = P * num_steps * bn

    targets2d = targets.astype(jnp.int32).reshape(N, 1)
    if n_pad != N:
        logits = jnp.pad(logits, ((0, n_pad - N), (0, 0)))
        targets2d = jnp.pad(targets2d, ((0, n_pad - N), (0, 0)))

    has_weight = weight is not None
    inputs = [logits, targets2d]
    in_specs = [
        pl.BlockSpec((bn, C), lambda p, j: (p * num_steps + j, 0)),   # logits tile
        pl.BlockSpec((bn, 1), lambda p, j: (p * num_steps + j, 0)),   # target tile
    ]
    if has_weight:
        inputs.append(jnp.asarray(weight, jnp.float32).reshape(1, C))
        in_specs.append(pl.BlockSpec((1, C), lambda p, j: (0, 0)))    # resident

    kernel = functools.partial(
        _focal_loss_kernel, gamma=float(gamma), total_n=N, block_n=bn,
        num_steps=num_steps, has_weight=has_weight, needs_mask=(n_pad != N))

    partials = pl.pallas_call(
        kernel,
        out_shape=jax.ShapeDtypeStruct((P, 8, 128), jnp.float32),
        grid_spec=pltpu.PrefetchScalarGridSpec(
            num_scalar_prefetch=0,
            grid=(P, num_steps),
            in_specs=in_specs,
            # per-partial output tile kept (8,128)-aligned; the partial sum is
            # splatted across it and one element per partial is read back
            out_specs=pl.BlockSpec((1, 8, 128), lambda p, j: (p, 0, 0)),
            scratch_shapes=[pltpu.VMEM((bn, 1), jnp.float32)],        # running sum
        ),
        compiler_params=pltpu.CompilerParams(
            dimension_semantics=("parallel", "arbitrary")),
    )(*inputs)

    total = jnp.sum(partials[:, 0, 0])
    if reduction == "sum":
        return total
    # reduction='mean' on the 'none'-reduced focal terms: divide by N
    return total / jnp.float32(N)


if __name__ == "__main__":
    key = jax.random.PRNGKey(0)
    k1, k2, k3 = jax.random.split(key, 3)

    # ---- case 1: weight=None, gamma=2 (specialized x*x path), multi-tile grid ----
    N, C = 64, 16
    logits = jax.random.normal(k1, (N, C), dtype=jnp.float32)
    targets = jax.random.randint(k2, (N,), 0, C, dtype=jnp.int32)

    loss = jax.block_until_ready(
        focal_loss(logits, targets, gamma=2.0, block_n=16, num_partials=2))

    log_probs = jax.nn.log_softmax(logits, axis=1)
    lt = jnp.take_along_axis(log_probs, targets[:, None], axis=1)[:, 0]
    p_t = jnp.exp(lt)
    ref = jnp.mean(((1.0 - p_t) ** 2.0) * (-lt))
    assert jnp.allclose(loss, ref, rtol=1e-4, atol=1e-5), (loss, ref)

    # ---- case 2: class weights + fractional gamma + ragged (masked) batch ----
    N2 = 60
    logits2 = jax.random.normal(k3, (N2, C), dtype=jnp.float32)
    targets2 = jax.random.randint(k2, (N2,), 0, C, dtype=jnp.int32)
    w = jnp.linspace(0.5, 1.5, C, dtype=jnp.float32)

    loss2 = jax.block_until_ready(
        focal_loss(logits2, targets2, weight=w, gamma=1.5,
                   block_n=16, num_partials=2))

    lp2 = jax.nn.log_softmax(logits2, axis=1)
    lt2 = jnp.take_along_axis(lp2, targets2[:, None], axis=1)[:, 0]
    p2 = jnp.exp(lt2)
    ref2 = jnp.mean(((1.0 - p2) ** 1.5) * (-(w[targets2]) * lt2))
    assert jnp.allclose(loss2, ref2, rtol=1e-4, atol=1e-5), (loss2, ref2)

    print("KERNEL_OK")
</pallas_src>

<mosaic_0001>
module attributes {stable_mosaic.version = 11 : i64} {
  func.func @_focal_loss_kernel(%arg0: i32, %arg1: i32, %arg2: memref<16x16xf32, #tpu.memory_space<vmem>>, %arg3: memref<16x1xi32, #tpu.memory_space<vmem>>, %arg4: memref<1x8x128xf32, #tpu.memory_space<vmem>>, %arg5: memref<16x1xf32, #tpu.memory_space<vmem>>) attributes {dimension_semantics = [#tpu.dimension_semantics<parallel>, #tpu.dimension_semantics<arbitrary>], iteration_bounds = array<i64: 2, 2>, scalar_prefetch = 0 : i64, scratch_operands = 1 : i64, tpu.core_type = #tpu.core_type<tc>, window_params = [{transform_indices = @transform_0, window_bounds = array<i64: 16, 16>}, {transform_indices = @transform_1, window_bounds = array<i64: 16, 1>}, {transform_indices = @transform_2, window_bounds = array<i64: 1, 8, 128>}]} {
    %c0_i32 = arith.constant 0 : i32
    %0 = arith.cmpi eq, %arg1, %c0_i32 : i32
    %1 = arith.extui %0 : i1 to i32
    %c0_i32_0 = arith.constant 0 : i32
    %2 = arith.cmpi ne, %1, %c0_i32_0 : i32
    scf.if %2 {
      %cst_15 = arith.constant 0.000000e+00 : f32
      %36 = vector.broadcast %cst_15 : f32 to vector<16x1xf32>
      %c0_16 = arith.constant 0 : index
      %c0_17 = arith.constant 0 : index
      %37 = vector.load %arg5[%c0_16, %c0_17] : memref<16x1xf32, #tpu.memory_space<vmem>>, vector<16x1xf32>
      tpu.vector_store %arg5[%c0_16, %c0_17], %36 {strides = array<i32>} : memref<16x1xf32, #tpu.memory_space<vmem>>, vector<16x1xf32>,
    } else {
    }
    %c0 = arith.constant 0 : index
    %c0_1 = arith.constant 0 : index
    %3 = vector.load %arg2[%c0, %c0_1] : memref<16x16xf32, #tpu.memory_space<vmem>>, vector<16x16xf32>
    %c0_2 = arith.constant 0 : index
    %c0_3 = arith.constant 0 : index
    %4 = vector.load %arg3[%c0_2, %c0_3] : memref<16x1xi32, #tpu.memory_space<vmem>>, vector<16x1xi32>
    %cst = arith.constant dense<0xFF800000> : vector<16xf32>
    %5 = vector.multi_reduction <maximumf>, %3, %cst [1] : vector<16x16xf32> to vector<16xf32>
    %6 = vector.shape_cast %5 : vector<16xf32> to vector<16x1xf32>
    %7 = vector.broadcast %6 : vector<16x1xf32> to vector<16x16xf32>
    %8 = arith.subf %3, %7 : vector<16x16xf32>
    %9 = math.exp %8 : vector<16x16xf32>
    %cst_4 = arith.constant dense<0.000000e+00> : vector<16xf32>
    %10 = vector.multi_reduction <add>, %9, %cst_4 [1] : vector<16x16xf32> to vector<16xf32>
    %11 = vector.shape_cast %10 : vector<16xf32> to vector<16x1xf32>
    %12 = math.log %11 : vector<16x1xf32>
    %13 = tpu.iota {dimensions = array<i32: 1>} : vector<16x16xi32>
    %14 = vector.broadcast %4 : vector<16x1xi32> to vector<16x16xi32>
    %15 = arith.cmpi eq, %13, %14 : vector<16x16xi32>
    %cst_5 = arith.constant 0.000000e+00 : f32
    %16 = vector.broadcast %cst_5 : f32 to vector<16x16xf32>
    %17 = arith.select %15, %8, %16 : vector<16x16xi1>, vector<16x16xf32>
    %cst_6 = arith.constant dense<0.000000e+00> : vector<16xf32>
    %18 = vector.multi_reduction <add>, %17, %cst_6 [1] : vector<16x16xf32> to vector<16xf32>
    %19 = vector.shape_cast %18 : vector<16xf32> to vector<16x1xf32>
    %20 = arith.subf %19, %12 : vector<16x1xf32>
    %21 = math.exp %20 : vector<16x1xf32>
    %cst_7 = arith.constant 1.000000e+00 : f32
    %22 = vector.broadcast %cst_7 : f32 to vector<16x1xf32>
    %23 = arith.subf %22, %21 : vector<16x1xf32>
    %cst_8 = arith.constant 0.000000e+00 : f32
    %24 = vector.broadcast %cst_8 : f32 to vector<16x1xf32>
    %25 = arith.maximumf %23, %24 : vector<16x1xf32>
    %26 = arith.mulf %25, %25 : vector<16x1xf32>
    %cst_9 = arith.constant 0.000000e+00 : f32
    %27 = vector.broadcast %cst_9 : f32 to vector<16x1xf32>
    %28 = arith.subf %27, %20 : vector<16x1xf32>
    %29 = arith.mulf %26, %28 : vector<16x1xf32>
    %c0_10 = arith.constant 0 : index
    %c0_11 = arith.constant 0 : index
    %30 = vector.load %arg5[%c0_10, %c0_11] : memref<16x1xf32, #tpu.memory_space<vmem>>, vector<16x1xf32>
    %31 = arith.addf %30, %29 : vector<16x1xf32>
    %c0_12 = arith.constant 0 : index
    %c0_13 = arith.constant 0 : index
    %32 = vector.load %arg5[%c0_12, %c0_13] : memref<16x1xf32, #tpu.memory_space<vmem>>, vector<16x1xf32>
    tpu.vector_store %arg5[%c0_12, %c0_13], %31 {strides = array<i32>} : memref<16x1xf32, #tpu.memory_space<vmem>>, vector<16x1xf32>,
    %c1_i32 = arith.constant 1 : i32
    %33 = arith.cmpi eq, %arg1, %c1_i32 : i32
    %34 = arith.extui %33 : i1 to i32
    %c0_i32_14 = arith.constant 0 : i32
    %35 = arith.cmpi ne, %34, %c0_i32_14 : i32
    scf.if %35 {
      %c0_15 = arith.constant 0 : index
      %c0_16 = arith.constant 0 : index
      %36 = vector.load %arg5[%c0_15, %c0_16] : memref<16x1xf32, #tpu.memory_space<vmem>>, vector<16x1xf32>
      %37 = vector.shape_cast %36 : vector<16x1xf32> to vector<1x16x1xf32>
      %cst_17 = arith.constant dense<0.000000e+00> : vector<1xf32>
      %38 = vector.multi_reduction <add>, %37, %cst_17 [1, 2] : vector<1x16x1xf32> to vector<1xf32>
      %39 = vector.shape_cast %38 : vector<1xf32> to vector<1x1x1xf32>
      %40 = vector.extract %39[0, 0, 0] : f32 from vector<1x1x1xf32>
      %41 = vector.broadcast %40 : f32 to vector<1x8x128xf32>
      %c0_18 = arith.constant 0 : index
      %c0_19 = arith.constant 0 : index
      %c0_20 = arith.constant 0 : index
      %42 = vector.load %arg4[%c0_18, %c0_19, %c0_20] : memref<1x8x128xf32, #tpu.memory_space<vmem>>, vector<1x8x128xf32>
      tpu.vector_store %arg4[%c0_18, %c0_19, %c0_20], %41 {strides = array<i32>} : memref<1x8x128xf32, #tpu.memory_space<vmem>>, vector<1x8x128xf32>,
    } else {
    }
    return
  }
  func.func @transform_0(%arg0: i32, %arg1: i32) -> (i32, i32) {
    %c2_i32 = arith.constant 2 : i32
    %0 = arith.muli %arg0, %c2_i32 : i32
    %1 = arith.addi %0, %arg1 : i32
    %c0_i32 = arith.constant 0 : i32
    %c0_i32_0 = arith.constant 0 : i32
    return %1, %c0_i32 : i32, i32
  }
  func.func @transform_1(%arg0: i32, %arg1: i32) -> (i32, i32) {
    %c2_i32 = arith.constant 2 : i32
    %0 = arith.muli %arg0, %c2_i32 : i32
    %1 = arith.addi %0, %arg1 : i32
    %c0_i32 = arith.constant 0 : i32
    %c0_i32_0 = arith.constant 0 : i32
    return %1, %c0_i32 : i32, i32
  }
  func.func @transform_2(%arg0: i32, %arg1: i32) -> (i32, i32, i32) {
    %c0_i32 = arith.constant 0 : i32
    %c0_i32_0 = arith.constant 0 : i32
    %c0_i32_1 = arith.constant 0 : i32
    return %arg0, %c0_i32, %c0_i32_0 : i32, i32, i32
  }
}

</mosaic_0001>

<bundles_post_ra>
// kernel: tpu_custom_call.1
= control target key start
LH: loop header
LB: loop body
LE: loop exit
PB: predicated region body
PF: predicated region fallthrough
CT: control target
= control target key end

     0   :  { %7 = vsyncpa [#allocation4], 0  ;;  %s761_s0 = inlined_call_operand.vmem [shape: f32[64,16], index: 0, kind: input, shape index: {}]   ;;  %s762_s1 = inlined_call_operand.vmem [shape: s32[64,1], index: 1, kind: input, shape index: {}]   ;;  %s763_s2 = inlined_call_operand.hbm [shape: f32[2,8,128], index: 2, kind: output, shape index: {}]  }
   0x1   :  { %9 = vsyncpa [#allocation4 + $0x1], 0  ;;  %s620_s9 = smov 0   ;;  %s622_s10 = smov 0  }
   0x2   :  { %s624_s11 = smov 0   ;;  %s626_s12 = smov 0  }
   0x3   :  { %s628_s13 = smov 0   ;;  %s630_s14 = smov 0  }
   0x4   :  { %s632_s15 = smov 0   ;;  %s634_s16 = smov 0  }
   0x5 LB: > { %s397_s17 = sadd.s32 4294967295, %s600_s16   ;;  %s398_s18 = sadd.s32 4294967294, %s600_s16   ;;  %s600_s16 = sphi %s634_s16, %s15_s16   ;;  %s596_s15 = sphi %s632_s15, %s772_s15   ;;  %s592_s14 = sphi %s630_s14, %s771_s14   ;;  %s588_s13 = sphi %s628_s13, %s770_s13   ;;  %s584_s12 = sphi %s626_s12, %s769_s12   ;;  %s580_s11 = sphi %s624_s11, %s768_s11   ;;  %s576_s10 = sphi %s622_s10, %s767_s10   ;;  %s572_s9 = sphi %s620_s9, %s766_s9  }
   0x6   : > { %s24_s19 = sadd.s32 1, %s592_s14  ;;  %s27_s20 = sadd.s32 1, %s596_s15 }
   0x7   : > { %p25_p0 = scmp.ge.s32.totalorder %s24_s19, 2  ;;  %p104_p1 = scmp.ne.s32.totalorder %s580_s11, %s576_s10 }
   0x8   : > { %p105_p2 = scmp.eq.s32.totalorder %s397_s17, 3  ;;  %p110_p4 = scmp.ne.s32.totalorder %s576_s10, %s572_s9 }
   0x9   : > { %s774_s19 = smov (%p25_p0, %s24_s19), 0  ;;  %s776_s20 = smov (!%p25_p0, %s27_s20), %s596_s15 }
   0xa   : > { %p669_p3 = por %p105_p2, %p104_p1  ;;  %p29_p5 = scmp.ge.s32.totalorder %s776_s20, 2 }
   0xb   : > { %p111_p6 = scmp.eq.s32.totalorder %s398_s18, 3  ;;  %p405_p7 = scmp.ge.s32.totalorder %s600_s16, 1 }
   0xc   : > { %p155_p8 = scmp.lt.s32.totalorder %s600_s16, 5  ;;  %s778_s20 = smov (%p29_p5, %s776_s20), 0 }
   0xd   : > { %p679_p9 = por %p111_p6, %p110_p4  ;;  %s91_s23 = ssub.s32 %s596_s15, %s778_s20 }
   0xe   : > { %p156_p10 = pnand %p405_p7, %p155_p8  ;;  %s94_s24 = sadd.s32 1, %s580_s11 }
   0xf   : > { %p92_p11 = scmp.eq.s32.totalorder %s91_s23, 0  ;;  %s183_s26 = sand.u32 (!%p156_p10), 1, %s576_s10  }
  0x10   : > { %159 = sbr.rel (%p156_p10) target bundleno = 610 (0x262), region = 28  ;;  %s407_s27 = sshll.u32 (!%p156_p10), %s588_s13, 1 }
  0x11   : > { %s687_s25 = scalar_select %p92_p11, %s580_s11, %s94_s24  }
  0x12   : > { %s693_s28 = sshll.u32 (!%p156_p10), %s183_s26, 3  ;;  %s187_s29 = sadd.s32 (!%p156_p10), %s584_s12, %s407_s27 }
  0x13   : > { %s408_s30 = sshll.u32 (!%p156_p10), %s187_s29, 1  ;;  %s185_s18 = scalar_lea.vmem (!%p156_p10), [#allocation3], %s693_s28 }
  0x14   : > { %p189_p12 = scmp.lt.s32.totalorder (!%p156_p10), %s408_s30, 7  ;;  %p413_p13 = scmp.ne.s32.totalorder (!%p156_p10), %s584_s12, 0 }
  0x16   : > { %s780_s30 = smov (!%p189_p12, %s408_s30), 7  ;;  %209 = sbr.rel (%p413_p13) target bundleno = 29 (0x1d), region = 32 }
  0x17   : > { %s409_s3 = sshll.u32 %s780_s30, 3 }
  0x18   : > { %s192_s6 = scalar_lea.vmem %s761_s0, %s409_s3  ;;  %s202_s17 = scalar_lea.vmem %s762_s1, %s409_s3 }
  0x1b   : > { %vm210_vm0 = vcmask 7168   ;;  %v602_v0 = vmov 0.0  }
  0x1c   : > { %211 = vst.msk [vmem:[#allocation2] sm:$0xff] %vm210_vm0, %v602_v0  ;;  %212 = vst.msk [vmem:[#allocation2 + $0x8] sm:$0xff] %vm210_vm0, %v602_v0 }
  0x1d PF: > { %v213_v1 = vld [vmem:[%s192_s6] sm:$0xff]  ;;  %vm217_vm1 = vcmask 130048   ;;  %v214_v2 = vld [vmem:[%s192_s6 + $0x8] sm:$0xff]  ;;  %v603_v5 = vmov 0   ;;  %v240_v14 = vlaneseq  ;;  %vm278_vm4 = vcmask 7168   ;;  %p414_p0 = scmp.ne.s32.totalorder %s584_s12, 1 }
  0x1e   : > { %v215_v3 = vld [vmem:[%s202_s17] sm:$0xff]  ;;  %v218_v4 = vsel %vm217_vm1, %v213_v1, -inf  ;;  %494 = vset.pattern.permute.xlu1 %v603_v5  ;;  %495 = vset.pattern.permute.xlu0 %v603_v5  ;;  %v221_v6 = vsel %vm217_vm1, %v214_v2, -inf  ;;  %v216_v7 = vld [vmem:[%s202_s17 + $0x8] sm:$0xff] }
  0x1f   : > { %219 = vmax.xlane.f32.xlu0 %v218_v4  ;;  %243 = vperm.xlu1 %494, %v215_v3   ;;  %v241_v16 = vand.u32 127, %v240_v14 }
  0x23   : > { %222 = vmax.xlane.f32.xlu0 %v221_v6  ;;  %246 = vperm.xlu1 %494, %v216_v7   ;;  %v274_v45 = vld [vmem:[#allocation2] sm:$0xff]  ;;  %v275_v51 = vld [vmem:[#allocation2 + $0x8] sm:$0xff] }
  0x9a   : > { %v244_v15 = vpop.permute.xlu1 %243 }
  0x9b   : > { %vm248_vm2 = vcmp.eq.s32.totalorder %v241_v16, %v244_v15 }
  0x9e   : > { %v247_v18 = vpop.permute.xlu1 %246 }
  0x9f   : > { %vm249_vm3 = vcmp.eq.s32.totalorder %v241_v16, %v247_v18 }
  0xa8   : > { %v220_v8 = vpop.xlane.xlu0 %219 }
  0xa9   : > { %v224_v9 = vsub.f32 %v213_v1, %v220_v8 }
  0xab   : > { %v226_v10 = vmul.f32 1.442695, %v224_v9  ;;  %v250_v20 = vsel %vm248_vm2, %v224_v9, 0.0 }
  0xac   : > { %v223_v11 = vpop.xlane.xlu0 %222  ;;  %v252_v22 = vsel %vm217_vm1, %v250_v20, 0.0 }
  0xad   : > { %496 = vpow2.f32 %v226_v10  ;;  %v225_v12 = vsub.f32 %v214_v2, %v223_v11 }
  0xaf   : > { %v228_v13 = vmul.f32 1.442695, %v225_v12  ;;  %v251_v24 = vsel %vm249_vm3, %v225_v12, 0.0 }
  0xb0   : > { %v255_v25 = vsel %vm217_vm1, %v251_v24, 0.0 }
  0xb1   : > { %498 = vpow2.f32 %v228_v13 }
  0xba   : > { %v497_v17 = vpop.eup %496 }
  0xbb   : > { %v230_v19 = vsel %vm217_vm1, %v497_v17, 0.0 }
  0xbc   : > { %231 = vadd.xlane.f32.xlu0 %v230_v19 }
  0xbe   : > { %v499_v21 = vpop.eup %498 }
  0xbf   : > { %v233_v23 = vsel %vm217_vm1, %v499_v21, 0.0 }
  0xc0   : > { %253 = vadd.xlane.f32.xlu0 %v252_v22  ;;  %234 = vadd.xlane.f32.xlu1 %v233_v23 }
  0xc4   : > { %256 = vadd.xlane.f32.xlu0 %v255_v25 }
 0x145   : > { %v232_v26 = vpop.xlane.xlu0 %231 }
 0x146   : > { %500 = vlog2.f32 %v232_v26 }
 0x149   : > { %v235_v27 = vpop.xlane.xlu1 %234  ;;  %v254_v29 = vpop.xlane.xlu0 %253 }
 0x14a   : > { %502 = vlog2.f32 %v235_v27 }
 0x14d   : > { %v257_v35 = vpop.xlane.xlu0 %256 }
 0x153   : > { %v501_v28 = vpop.eup %500 }
 0x154   : > { %v237_v30 = vmul.f32 0.6931472, %v501_v28 }
 0x156   : > { %v258_v31 = vsub.f32 %v254_v29, %v237_v30 }
 0x157   : > { %v503_v32 = vpop.eup %502 }
 0x158   : > { %v260_v33 = vmul.f32 1.442695, %v258_v31  ;;  %v239_v34 = vmul.f32 0.6931472, %v503_v32  ;;  %v270_v43 = vsub.f32 0.0, %v258_v31 }
 0x15a   : > { %504 = vpow2.f32 %v260_v33  ;;  %v259_v36 = vsub.f32 %v257_v35, %v239_v34 }
 0x15c   : > { %v262_v37 = vmul.f32 1.442695, %v259_v36  ;;  %v271_v50 = vsub.f32 0.0, %v259_v36 }
 0x15e   : > { %506 = vpow2.f32 %v262_v37 }
 0x167   : > { %v505_v38 = vpop.eup %504 }
 0x168   : > { %v264_v39 = vsub.f32 1.0, %v505_v38 }
 0x16a   : > { %v266_v40 = vmax.f32 %v264_v39, 0.0 }
 0x16b   : > { %v507_v41 = vpop.eup %506 }
 0x16c   : > { %v268_v42 = vmul.f32 %v266_v40, %v266_v40  ;;  %v265_v44 = vsub.f32 1.0, %v507_v41 }
 0x16e   : > { %v272_v46 = vmul.f32 %v270_v43, %v268_v42  ;;  %v267_v47 = vmax.f32 %v265_v44, 0.0 }
 0x170   : > { %v276_v48 = vadd.f32 %v274_v45, %v272_v46  ;;  %v269_v49 = vmul.f32 %v267_v47, %v267_v47 }
 0x172   : > { %279 = vst.msk [vmem:[#allocation2] sm:$0xff] %vm278_vm4, %v276_v48  ;;  %v273_v52 = vmul.f32 %v271_v50, %v269_v49  ;;  %284 = sbr.rel (%p414_p0) target bundleno = 587 (0x24b), region = 36 }
 0x174   : > { %v277_v53 = vadd.f32 %v275_v51, %v273_v52 }
 0x176   : > { %280 = vst.msk [vmem:[#allocation2 + $0x8] sm:$0xff] %vm278_vm4, %v277_v53 }
 0x179   : > { %v285_v54 = vld [vmem:[#allocation2] sm:$0xff] }
 0x17a   : > { %v287_v56 = vsel %vm278_vm4, %v285_v54, 0.0 }
 0x17d   : > { %v286_v55 = vld [vmem:[#allocation2 + $0x8] sm:$0xff] }
 0x17e   : > { %v288_v57 = vsel %vm278_vm4, %v286_v55, 0.0 }
 0x17f   : > { %v289_v58 = vadd.f32 %v288_v57, %v287_v56 }
 0x181   : > { %290 = vadd.xlane.f32.xlu0 %v289_v58 }
 0x20a   : > { %v291_v59 = vpop.xlane.xlu0 %290 }
 0x20b   : > { %v292_v60 = vrot.slane %v291_v59, 4 }
 0x20d   : > { %v293_v61 = vadd.f32 %v292_v60, %v291_v59 }
 0x20f   : > { %v294_v62 = vrot.slane %v293_v61, 2 }
 0x211   : > { %v295_v63 = vadd.f32 %v294_v62, %v293_v61 }
 0x213   : > { %v296_v0 = vrot.slane %v295_v63, 1 }
 0x215   : > { %v297_v1 = vadd.f32 %v296_v0, %v295_v63 }
 0x217   : > { %419 = vpush %v297_v1 }
 0x248   : > { %s420_s23 = spop %419 }
 0x249   : > { %v299_v2 = vstv %s420_s23 }
 0x24a   : > { %300 = vst [vmem:[%s185_s18] sm:$0xff] %v299_v2 }
 0x24b PF: > { %s416_s12 = sshll.u32 %s588_s13, 7  ;;  %s315_s30 = sshll.u32 %s185_s18, 4  ;;  %s316_s30 = int_to_ptr.vmem [resolvable:$true] %s315_s30 }
 0x24c   : > { %s313_s29 = scalar_lea.hbm %s763_s2, %s416_s12  ;;  %s302_s3 = scalar_lea.sflag [#allocation4], %s183_s26 }
 0x24d   : > { %s508_s4 = scalar_lea.vmem %s316_s30, 128  ;;  %s604_s5 = smov [#allocation3]  }
 0x24e   : > { %p509_p1 = scmp.ne.s32.totalorder %s316_s30, %s508_s4  ;;  %s512_s6 = sshll.u32 %s604_s5, 4  ;;  %s513_s6 = int_to_ptr.vmem [resolvable:$false] %s512_s6 }
 0x24f   : > { %s514_s7 = scalar_lea.vmem %s513_s6, 256  ;;  %p515_p5 = scmp.lt.s32.totalorder %s316_s30, %s513_s6 }
 0x250   : > { %p510_p2 = pnand %p509_p1, %p669_p3  ;;  %p516_p6 = scmp.lt.s32.totalorder %s514_s7, %s508_s4 }
 0x252   : > { %p511_p4 = pneg %p510_p2  ;;  %p517_p7 = por %p516_p6, %p515_p5 }
 0x254   : > { %p518_p8 = pnand %p517_p7, %p511_p4 }
 0x256   : > { %521 = shalt.err (!%p518_p8)
}
 0x257   : > { %s522_s13 = scalar_lea.hbm %s313_s29, 128  ;;  %s526_s8 = scalar_lea.hbm %s763_s2, 256 }
 0x258   : > { %p523_p10 = scmp.ne.s32.totalorder %s313_s29, %s522_s13  ;;  %p527_p13 = scmp.lt.s32.totalorder %s313_s29, %s763_s2 }
 0x259   : > { %p528_p0 = scmp.lt.s32.totalorder %s526_s8, %s522_s13 }
 0x25a   : > { %p524_p11 = pnand %p523_p10, %p669_p3 }
 0x25b   : > { %p529_p1 = por %p528_p0, %p527_p13 }
 0x25c   : > { %p525_p12 = pneg %p524_p11 }
 0x25e   : > { %p530_p2 = pnand %p529_p1, %p525_p12 }
 0x260   : > { %533 = shalt.err (!%p530_p2)
}
 0x261   : > { %421 = dma.vmem_to_hbm [thread:$0]  (%p669_p3), %s316_s30, 128, %s313_s29, %s302_s3  }
 0x262 PF: > { %p427_p4 = scmp.ge.s32.totalorder %s600_s16, 2  ;;  %s327_s23 = sand.u32 1, %s572_s9  }
 0x263   : > { %s328_s12 = scalar_lea.sflag [#allocation4], %s327_s23 }
 0x264   : > { %p424_p5 = pnand %p427_p4, %p679_p9 }
 0x266   : > { %p425_p6 = pneg %p424_p5 }
 0x268   : > { %567 = dma.done.wait (%p425_p6), %s328_s12, 128  }
 0x269   : > { %569 = vsyncadd (%p425_p6), %s328_s12, 4294967168  ;;  %s15_s16 = sadd.s32 1, %s600_s16   ;;  %s766_s9 = smov %s576_s10 }
 0x26a   : > { %p12_p7 = scmp.ge.s32.totalorder %s15_s16, 6   ;;  %s767_s10 = smov %s580_s11 }
 0x26b   : > { %s768_s11 = smov %s687_s25  ;;  %s769_s12 = smov %s592_s14 }
 0x26c   : > { %s770_s13 = smov %s596_s15  ;;  %s771_s14 = smov %s774_s19 }
 0x26d   : > { %s772_s15 = smov %s778_s20  ;;  %14 = sbr.rel (!%p12_p7) target bundleno = 5 (0x5), region = 74 }
 0x272   :  { %333 = vsyncpa [#allocation4], 1 }
 0x273   :  { %335 = vsyncpa [#allocation4 + $0x1], 1 }

</bundles_post_ra>
